<compile_context>
chip_gen: v5e
topology: v5e:2x2
jax: 0.10.0
libtpu: 0.0.40
codegen_flags: <defaults>
</compile_context>

<pallas_src>
import jax
import jax.numpy as jnp
import numpy as np
from jax import lax
from jax.experimental import pallas as pl
from jax.experimental.pallas import tpu as pltpu


def _custom_attention_kernel(x2_ref, wvT_ref, bvf_ref, logT_ref, exp_ref,
                             wfT_ref, bf_ref, o_ref):
    B = o_ref.shape[0]
    G, H = logT_ref.shape
    HD = wvT_ref.shape[1]                                   # H * D

    # ---- softmax over groups (rows of the transposed logits), per head ----
    logits_t = logT_ref[...]                                # (G, H)
    m = jnp.max(logits_t, axis=0, keepdims=True)            # (1, H)
    e = jnp.exp(logits_t - m)                               # (G, H)
    s = jnp.sum(e, axis=0, keepdims=True)                   # (1, H)
    soft_t = e / s                                          # (G, H), cols sum to 1

    # ---- all heads' W_v projection in one lane-dense MXU matmul ----
    # v_all[b*G+g, h*D+e] = (x[b,g,:] @ Wv_h^T + bv_h)[e]
    v_all = jnp.dot(x2_ref[...], wvT_ref[...],
                    preferred_element_type=jnp.float32) + bvf_ref[...]  # (B*G, H*D)

    # ---- expand softmax weights along head lanes (constant 0/1 expander):
    #      w_exp[g, h*D+e] = soft_t[g, h]
    w_exp = jnp.dot(soft_t, exp_ref[...],
                    preferred_element_type=jnp.float32)     # (G, H*D)

    # ---- weighted sum over groups per batch row, then per-head ReLU ----
    # Stays fully 2D and vreg-aligned (static, tiny B).
    rows = []
    for b in range(B):
        vb = v_all[b * G:(b + 1) * G, :]                    # (G, H*D)
        rows.append(jnp.sum(vb * w_exp, axis=0, keepdims=True))   # (1, H*D)
    heads = jnp.maximum(jnp.concatenate(rows, axis=0), 0.0)       # (B, H*D)

    # ---- final Linear(H*D -> D) + ReLU: single K = H*D = 128 contraction ----
    out = jnp.dot(heads, wfT_ref[...],
                  preferred_element_type=jnp.float32) + bf_ref[...]
    o_ref[...] = jnp.maximum(out, 0.0).astype(o_ref.dtype)


@jax.jit
def custom_attention_pallas(x, wv, bv, wlog, wf, bf):
    """x: (B, G, D); wv: (H, D, D) PyTorch (out,in) layout; bv: (H, 1, D);
    wlog: (H, 1, G) raw attention logits; wf: (H, D, D) with
    wf[h] == W_final[:, h*D:(h+1)*D]; bf: (1, D)."""
    B, G, D = x.shape
    H = wv.shape[0]

    # ---- wrapper-side layout plumbing (plain JAX) ----
    x2 = x.reshape(B * G, D)                                            # (B*G, D)
    wvT_all = jnp.concatenate([wv[h].T for h in range(H)], axis=1)      # (D, H*D)
    bv_flat = jnp.concatenate([bv[h] for h in range(H)], axis=1)        # (1, H*D)
    logits_t = jnp.transpose(wlog[:, 0, :])                             # (G, H)
    expander = jnp.repeat(jnp.eye(H, dtype=x.dtype), D, axis=1)         # (H, H*D) 0/1
    wfT = jnp.concatenate([wf[h].T for h in range(H)], axis=0)          # (H*D, D)

    vmem = pl.BlockSpec(memory_space=pltpu.MemorySpace.VMEM)
    return pl.pallas_call(
        _custom_attention_kernel,
        out_shape=jax.ShapeDtypeStruct((B, D), x.dtype),
        in_specs=[vmem] * 7,
        out_specs=vmem,
    )(x2, wvT_all, bv_flat, logits_t, expander, wfT, bf)


def custom_attention_ref(x, wv, bv, wlog, wf, bf):
    """Pure-JAX reference mirroring the PyTorch forward (highest precision)."""
    H = wv.shape[0]
    outs = []
    for h in range(H):
        v = jnp.einsum('bgd,ed->bge', x, wv[h],
                       precision=lax.Precision.HIGHEST) + bv[h]         # (B, G, D)
        w = jax.nn.softmax(wlog[h][0])                                  # (G,)
        res = jnp.sum(v * w[None, :, None], axis=1)                     # (B, D)
        outs.append(jax.nn.relu(res))
    cat = jnp.concatenate(outs, axis=1)                                 # (B, H*D)
    wf_full = jnp.concatenate([wf[h] for h in range(H)], axis=1)        # (D, H*D)
    return jax.nn.relu(
        jnp.dot(cat, wf_full.T, precision=lax.Precision.HIGHEST) + bf)


if __name__ == "__main__":
    # small shapes consistent with the module
    B, G, D, H = 2, 8, 32, 4

    key = jax.random.PRNGKey(0)
    kx, kwv, kbv, kwl, kwf, kbf = jax.random.split(key, 6)

    x = jax.random.normal(kx, (B, G, D), dtype=jnp.float32)

    # deterministic synthetic parameters (shapes from __init__)
    wv = jax.random.normal(kwv, (H, D, D), dtype=jnp.float32) * (1.0 / np.sqrt(D))
    bv = jax.random.normal(kbv, (H, 1, D), dtype=jnp.float32) * 0.1
    wlog = jax.random.normal(kwl, (H, 1, G), dtype=jnp.float32)
    wf = jax.random.normal(kwf, (H, D, D), dtype=jnp.float32) * (1.0 / np.sqrt(D * H))
    bf = jax.random.normal(kbf, (1, D), dtype=jnp.float32) * 0.1

    out = jax.block_until_ready(custom_attention_pallas(x, wv, bv, wlog, wf, bf))

    ref = custom_attention_ref(x, wv, bv, wlog, wf, bf)
    np.testing.assert_allclose(np.asarray(out), np.asarray(ref),
                               rtol=2e-3, atol=2e-3)
    print("KERNEL_OK")
</pallas_src>

<mosaic_0001>
module attributes {stable_mosaic.version = 11 : i64} {
  func.func @_custom_attention_kernel(%arg0: memref<16x32xf32, #tpu.memory_space<vmem>>, %arg1: memref<32x128xf32, #tpu.memory_space<vmem>>, %arg2: memref<1x128xf32, #tpu.memory_space<vmem>>, %arg3: memref<8x4xf32, #tpu.memory_space<vmem>>, %arg4: memref<4x128xf32, #tpu.memory_space<vmem>>, %arg5: memref<128x32xf32, #tpu.memory_space<vmem>>, %arg6: memref<1x32xf32, #tpu.memory_space<vmem>>, %arg7: memref<2x32xf32, #tpu.memory_space<vmem>>) attributes {dimension_semantics = [], scalar_prefetch = 0 : i64, scratch_operands = 0 : i64, tpu.core_type = #tpu.core_type<tc>} {
    %c0 = arith.constant 0 : index
    %c0_0 = arith.constant 0 : index
    %0 = vector.load %arg3[%c0, %c0_0] : memref<8x4xf32, #tpu.memory_space<vmem>>, vector<8x4xf32>
    %cst = arith.constant dense<0xFF800000> : vector<4xf32>
    %1 = vector.multi_reduction <maximumf>, %0, %cst [0] : vector<8x4xf32> to vector<4xf32>
    %2 = vector.shape_cast %1 : vector<4xf32> to vector<1x4xf32>
    %3 = vector.broadcast %2 : vector<1x4xf32> to vector<8x4xf32>
    %4 = arith.subf %0, %3 : vector<8x4xf32>
    %5 = math.exp %4 : vector<8x4xf32>
    %cst_1 = arith.constant dense<0.000000e+00> : vector<4xf32>
    %6 = vector.multi_reduction <add>, %5, %cst_1 [0] : vector<8x4xf32> to vector<4xf32>
    %7 = vector.shape_cast %6 : vector<4xf32> to vector<1x4xf32>
    %8 = vector.broadcast %7 : vector<1x4xf32> to vector<8x4xf32>
    %9 = arith.divf %5, %8 : vector<8x4xf32>
    %c0_2 = arith.constant 0 : index
    %c0_3 = arith.constant 0 : index
    %10 = vector.load %arg0[%c0_2, %c0_3] : memref<16x32xf32, #tpu.memory_space<vmem>>, vector<16x32xf32>
    %c0_4 = arith.constant 0 : index
    %c0_5 = arith.constant 0 : index
    %11 = vector.load %arg1[%c0_4, %c0_5] : memref<32x128xf32, #tpu.memory_space<vmem>>, vector<32x128xf32>
    %cst_6 = arith.constant dense<0.000000e+00> : vector<16x128xf32>
    %12 = tpu.matmul %10, %11, %cst_6 {dimension_numbers = #tpu.dot_dimension_numbers<[1], [0], [0], [1], [0, 0, 1, 1], [], []>} : vector<16x32xf32>, vector<32x128xf32>, vector<16x128xf32> -> vector<16x128xf32>
    %c0_7 = arith.constant 0 : index
    %c0_8 = arith.constant 0 : index
    %13 = vector.load %arg2[%c0_7, %c0_8] : memref<1x128xf32, #tpu.memory_space<vmem>>, vector<1x128xf32>
    %14 = vector.broadcast %13 : vector<1x128xf32> to vector<16x128xf32>
    %15 = arith.addf %12, %14 : vector<16x128xf32>
    %c0_9 = arith.constant 0 : index
    %c0_10 = arith.constant 0 : index
    %16 = vector.load %arg4[%c0_9, %c0_10] : memref<4x128xf32, #tpu.memory_space<vmem>>, vector<4x128xf32>
    %cst_11 = arith.constant dense<0.000000e+00> : vector<8x128xf32>
    %17 = tpu.matmul %9, %16, %cst_11 {dimension_numbers = #tpu.dot_dimension_numbers<[1], [0], [0], [1], [0, 0, 1, 1], [], []>} : vector<8x4xf32>, vector<4x128xf32>, vector<8x128xf32> -> vector<8x128xf32>
    %18 = vector.extract_strided_slice %15 {offsets = [0, 0], sizes = [8, 128], strides = [1, 1]} : vector<16x128xf32> to vector<8x128xf32>
    %19 = arith.mulf %18, %17 : vector<8x128xf32>
    %cst_12 = arith.constant dense<0.000000e+00> : vector<128xf32>
    %20 = vector.multi_reduction <add>, %19, %cst_12 [0] : vector<8x128xf32> to vector<128xf32>
    %21 = vector.shape_cast %20 : vector<128xf32> to vector<1x128xf32>
    %22 = vector.extract_strided_slice %15 {offsets = [8, 0], sizes = [8, 128], strides = [1, 1]} : vector<16x128xf32> to vector<8x128xf32>
    %23 = arith.mulf %22, %17 : vector<8x128xf32>
    %cst_13 = arith.constant dense<0.000000e+00> : vector<128xf32>
    %24 = vector.multi_reduction <add>, %23, %cst_13 [0] : vector<8x128xf32> to vector<128xf32>
    %25 = vector.shape_cast %24 : vector<128xf32> to vector<1x128xf32>
    %26 = tpu.concatenate %21, %25 in 0 : vector<1x128xf32>, vector<1x128xf32> -> vector<2x128xf32>
    %cst_14 = arith.constant 0.000000e+00 : f32
    %27 = vector.broadcast %cst_14 : f32 to vector<2x128xf32>
    %28 = arith.maximumf %26, %27 : vector<2x128xf32>
    %c0_15 = arith.constant 0 : index
    %c0_16 = arith.constant 0 : index
    %29 = vector.load %arg5[%c0_15, %c0_16] : memref<128x32xf32, #tpu.memory_space<vmem>>, vector<128x32xf32>
    %cst_17 = arith.constant dense<0.000000e+00> : vector<2x32xf32>
    %30 = tpu.matmul %28, %29, %cst_17 {dimension_numbers = #tpu.dot_dimension_numbers<[1], [0], [0], [1], [0, 0, 1, 1], [], []>} : vector<2x128xf32>, vector<128x32xf32>, vector<2x32xf32> -> vector<2x32xf32>
    %c0_18 = arith.constant 0 : index
    %c0_19 = arith.constant 0 : index
    %31 = vector.load %arg6[%c0_18, %c0_19] : memref<1x32xf32, #tpu.memory_space<vmem>>, vector<1x32xf32>
    %32 = vector.broadcast %31 : vector<1x32xf32> to vector<2x32xf32>
    %33 = arith.addf %30, %32 : vector<2x32xf32>
    %cst_20 = arith.constant 0.000000e+00 : f32
    %34 = vector.broadcast %cst_20 : f32 to vector<2x32xf32>
    %35 = arith.maximumf %33, %34 : vector<2x32xf32>
    %c0_21 = arith.constant 0 : index
    %c0_22 = arith.constant 0 : index
    %36 = vector.load %arg7[%c0_21, %c0_22] : memref<2x32xf32, #tpu.memory_space<vmem>>, vector<2x32xf32>
    tpu.vector_store %arg7[%c0_21, %c0_22], %35 {strides = array<i32>} : memref<2x32xf32, #tpu.memory_space<vmem>>, vector<2x32xf32>,
    return
  }
}

</mosaic_0001>

<bundles_post_ra>
// kernel: custom_attention_pallas.1
= control target key start
LH: loop header
LB: loop body
LE: loop exit
PB: predicated region body
PF: predicated region fallthrough
CT: control target
= control target key end

     0   :  { %vm105_vm0 = vcmask 1043456   ;;  %vm28_vm1 = vcmask 31744   ;;  %s367_s0 = inlined_call_operand.vmem [shape: f32[16,32], index: 0, kind: input, shape index: {}]   ;;  %s368_s1 = inlined_call_operand.vmem [shape: f32[32,128], index: 1, kind: input, shape index: {}]   ;;  %s369_s2 = inlined_call_operand.vmem [shape: f32[1,128], index: 2, kind: input, shape index: {}]   ;;  %s370_s3 = inlined_call_operand.vmem [shape: f32[8,4], index: 3, kind: input, shape index: {}]   ;;  %s371_s4 = inlined_call_operand.vmem [shape: f32[4,128], index: 4, kind: input, shape index: {}]   ;;  %s372_s5 = inlined_call_operand.vmem [shape: f32[128,32], index: 5, kind: input, shape index: {}]   ;;  %s373_s6 = inlined_call_operand.vmem [shape: f32[1,32], index: 6, kind: input, shape index: {}]   ;;  %s374_s7 = inlined_call_operand.hbm [shape: f32[2,32], index: 7, kind: output, shape index: {}]  }
   0x1   :  { %v66_v0 = vld [vmem:[%s368_s1 + $0x18] sm:$0xff]  ;;  %v65_v1 = vld [vmem:[%s368_s1 + $0x10] sm:$0xff]  ;;  %v64_v2 = vld [vmem:[%s368_s1 + $0x8] sm:$0xff] }
   0x2   :  { %90 = vmatpush.msra.mxu0 %v66_v0  ;;  %v101_v3 = vld [vmem:[%s371_s4] sm:$0xf] }
   0x3   :  { %v27_v4 = vld [vmem:[%s370_s3] sm:$0xff]  ;;  %207 = vmatpush.msk.msra.mxu1 %vm105_vm0, %v101_v3 }
   0x4   :  { %91 = vmatpush.msra.mxu0 %v65_v1  ;;  %v29_v5 = vsel %vm28_vm1, %v27_v4, -inf }
   0x5   :  { %12 = vsyncpa [#allocation3], 0  ;;  %v63_v6 = vld [vmem:[%s368_s1] sm:$0xff]  ;;  %v30_v7 = vrot.slane %v29_v5, 4  ;;  %vm71_vm2 = vcmask 261120   ;;  %v62_v13 = vld [vmem:[%s367_s0 + $0x8] sm:$0xff] }
   0x6   :  { %92 = vmatpush.msra.mxu0 %v64_v2  ;;  %v61_v8 = vld [vmem:[%s367_s0] sm:$0xff]  ;;  %v161_v19 = vld [vmem:[%s372_s5 + $0x78] sm:$0xff]  ;;  %v160_v20 = vld [vmem:[%s372_s5 + $0x70] sm:$0xff]  ;;  %vm143_vm7 = vcmask 1040384   ;;  %s242_s20 = smov [#allocation2]   ;;  %s196_s24 = sshll.u32 %s374_s7, 4  ;;  %s197_s24 = int_to_ptr.hbm [resolvable:$true] %s196_s24 }
   0x7   :  { %v31_v9 = vmax.f32 %v29_v5, %v30_v7  ;;  %166 = vmatpush.msra.mxu2 %v161_v19  ;;  %v159_v38 = vld [vmem:[%s372_s5 + $0x68] sm:$0xff]  ;;  %v158_v39 = vld [vmem:[%s372_s5 + $0x60] sm:$0xff]  ;;  %v157_v40 = vld [vmem:[%s372_s5 + $0x58] sm:$0xff]  ;;  %s194_s21 = sshll.u32 %s242_s20, 4  ;;  %vm187_vm8 = vcmask 254976   ;;  %s195_s21 = int_to_ptr.vmem [resolvable:$true] %s194_s21 }
   0x8   :  { %93 = vmatpush.msra.mxu0 %v63_v6  ;;  %v156_v41 = vld [vmem:[%s372_s5 + $0x50] sm:$0xff]  ;;  %v155_v42 = vld [vmem:[%s372_s5 + $0x48] sm:$0xff]  ;;  %v154_v43 = vld [vmem:[%s372_s5 + $0x40] sm:$0xff] }
   0x9   :  { %205 = vmatmul.msk.f32.vlgmr.msra.gmra.mxu0 %vm71_vm2, %v61_v8  ;;  %v32_v10 = vrot.slane %v31_v9, 2  ;;  %167 = vmatpush.msra.mxu2 %v160_v20  ;;  %v153_v44 = vld [vmem:[%s372_s5 + $0x38] sm:$0xff]  ;;  %v152_v45 = vld [vmem:[%s372_s5 + $0x30] sm:$0xff]  ;;  %v151_v46 = vld [vmem:[%s372_s5 + $0x28] sm:$0xff] }
   0xa   :  { %v150_v47 = vld [vmem:[%s372_s5 + $0x20] sm:$0xff]  ;;  %v149_v48 = vld [vmem:[%s372_s5 + $0x18] sm:$0xff]  ;;  %v148_v49 = vld [vmem:[%s372_s5 + $0x10] sm:$0xff] }
   0xb   :  { %v33_v11 = vmax.f32 %v31_v9, %v32_v10  ;;  %168 = vmatpush.msra.mxu2 %v159_v38  ;;  %v147_v50 = vld [vmem:[%s372_s5 + $0x8] sm:$0xff]  ;;  %v146_v51 = vld [vmem:[%s372_s5] sm:$0xff] }
   0xc   :  { %v210_v54 = vld [vmem:[%s369_s2] ss:$0 sm:$0xff] }
   0xd   :  { %v34_v12 = vrot.slane %v33_v11, 1  ;;  %169 = vmatpush.msra.mxu2 %v158_v39  ;;  %v211_v10 = vld [vmem:[%s373_s6] ss:$0 sm:$0xff] }
   0xf   :  { %v35_v14 = vmax.f32 %v33_v11, %v34_v12  ;;  %170 = vmatpush.msra.mxu2 %v157_v40 }
  0x11   :  { %206 = vmatmul.msk.f32.gmra.mxu0 %vm71_vm2, %v62_v13  ;;  %v36_v15 = vsub.f32 %v27_v4, %v35_v14  ;;  %171 = vmatpush.msra.mxu2 %v156_v41 }
  0x13   :  { %v37_v16 = vmul.f32 1.442695, %v36_v15  ;;  %172 = vmatpush.msra.mxu2 %v155_v42 }
  0x15   :  { %212 = vpow2.f32 %v37_v16  ;;  %173 = vmatpush.msra.mxu2 %v154_v43 }
  0x17   :  { %174 = vmatpush.msra.mxu2 %v153_v44 }
  0x19   :  { %175 = vmatpush.msra.mxu2 %v152_v45 }
  0x1b   :  { %v213_v17 = vpop.eup %212  ;;  %176 = vmatpush.msra.mxu2 %v151_v46 }
  0x1c   :  { %v39_v18 = vsel %vm28_vm1, %v213_v17, 0.0 }
  0x1d   :  { %v40_v21 = vrot.slane %v39_v18, 4  ;;  %177 = vmatpush.msra.mxu2 %v150_v47 }
  0x1f   :  { %v41_v22 = vadd.f32 %v40_v21, %v39_v18  ;;  %178 = vmatpush.msra.mxu2 %v149_v48 }
  0x21   :  { %v42_v23 = vrot.slane %v41_v22, 2  ;;  %179 = vmatpush.msra.mxu2 %v148_v49 }
  0x23   :  { %v43_v24 = vadd.f32 %v42_v23, %v41_v22  ;;  %180 = vmatpush.msra.mxu2 %v147_v50 }
  0x25   :  { %v44_v25 = vrot.slane %v43_v24, 1  ;;  %181 = vmatpush.msra.mxu2 %v146_v51 }
  0x27   :  { %v45_v26 = vadd.f32 %v44_v25, %v43_v24 }
  0x29   :  { %214 = vrcp.f32 %v45_v26  ;;  %v57_v29 = vand.u32 2147483648, %v45_v26  ;;  %vm51_vm3 = vweird.f32 %v45_v26  ;;  %v55_v31 = vand.u32 2147483647, %v45_v26 }
  0x2b   :  { %v58_v33 = vor.u32 1.1754944e-38, %v57_v29  ;;  %vm56_vm6 = vcmp.eq.f32.partialorder %v55_v31, 8.507059e+37 }
  0x2f   :  { %v215_v27 = vpop.eup %214 }
  0x30   :  { %v47_v28 = vmul.f32 %v215_v27, %v45_v26  ;;  %vm52_vm4 = vweird.f32 %v215_v27 }
  0x31   :  { %vm53_vm5 = vmor %vm51_vm3, %vm52_vm4 }
  0x32   :  { %v48_v30 = vsub.f32 1.0, %v47_v28 }
  0x34   :  { %v49_v32 = vmul.f32 %v215_v27, %v48_v30 }
  0x36   :  { %v50_v34 = vadd.f32 %v215_v27, %v49_v32 }
  0x38   :  { %v54_v35 = vsel %vm53_vm5, %v215_v27, %v50_v34 }
  0x39   :  { %v59_v36 = vsel %vm56_vm6, %v58_v33, %v54_v35 }
  0x3a   :  { %v60_v37 = vmul.f32 %v213_v17, %v59_v36 }
  0x3c   :  { %208 = vmatmul.msk.f32.vlgmr.msra.gmra.mxu1 %vm28_vm1, %v60_v37 }
  0x86   :  { %v95_v52 = vpop.f32.mrf.mxu0 }
  0x87   :  { %v96_v56 = vadd.f32 %v210_v54, %v95_v52 }
  0x8e   :  { %v98_v53 = vpop.f32.mrf.mxu0 }
  0x8f   :  { %v99_v55 = vadd.f32 %v210_v54, %v98_v53 }
  0xb9   :  { %v126_v57 = vpop.f32.mrf.mxu1 }
  0xba   :  { %v129_v58 = vmul.f32 %v126_v57, %v96_v56  ;;  %v136_v59 = vmul.f32 %v126_v57, %v99_v55 }
  0xbc   :  { %v130_v60 = vrot.slane %v129_v58, 4  ;;  %v137_v61 = vrot.slane %v136_v59, 4 }
  0xbe   :  { %v131_v62 = vadd.f32 %v130_v60, %v129_v58  ;;  %v138_v63 = vadd.f32 %v137_v61, %v136_v59 }
  0xc0   :  { %v132_v0 = vrot.slane %v131_v62, 2  ;;  %v139_v1 = vrot.slane %v138_v63, 2 }
  0xc2   :  { %v133_v2 = vadd.f32 %v132_v0, %v131_v62  ;;  %v140_v3 = vadd.f32 %v139_v1, %v138_v63 }
  0xc4   :  { %v134_v4 = vrot.slane %v133_v2, 1  ;;  %v141_v5 = vrot.slane %v140_v3, 1 }
  0xc6   :  { %v135_v6 = vadd.f32 %v134_v4, %v133_v2  ;;  %v142_v7 = vadd.f32 %v141_v5, %v140_v3 }
  0xc8   :  { %v144_v8 = vsel %vm143_vm7, %v135_v6, %v142_v7 }
  0xc9   :  { %v145_v9 = vmax.f32 %v144_v8, 0.0 }
  0xcb   :  { %182 = vmatmul.f32.vlgmr.msra.gmra.mxu2 %v145_v9 }
 0x14e   :  { %v183_v11 = vpop.f32.mrf.mxu2 }
 0x14f   :  { %v184_v12 = vadd.f32 %v211_v10, %v183_v11 }
 0x151   :  { %v186_v13 = vmax.f32 %v184_v12, 0.0 }
 0x153   :  { %188 = vst.msk [vmem:[#allocation2] sm:$0x3] %vm187_vm8, %v186_v13 }
 0x154   :  { %199 = dma.vmem_to_hbm [thread:$0]  %s195_s21, 32, %s197_s24, [#allocation3]  }
 0x155   :  { %240 = dma.done.wait [#allocation3], 32  }
 0x156   :  { %241 = vsyncadd [#allocation3], 4294967264 }
 0x157   :  { %204 = vsyncpa [#allocation3], 1 }

</bundles_post_ra>
